<compile_context>
chip_gen: v7x
topology: tpu7x:2x2x1
jax: 0.10.0
libtpu: 0.0.40
codegen_flags: <defaults>
</compile_context>

<pallas_src>
import functools

import jax
import jax.numpy as jnp
from jax.experimental import pallas as pl
from jax.experimental.pallas import tpu as pltpu

_H1 = 128          # fc1 output width
_H2 = 64           # logical fc2 output width
_H2_PAD = 128      # sublane-padded fc2 width used inside the kernel


def _round_up(x, m):
    return ((x + m - 1) // m) * m


def _default_max_tile():
    # v5e/v6e (128 MiB physical VMEM) take 4096-row tiles comfortably; on
    # v7x (64 MiB) stay at 2048, which also gives the 2 TCs >=2 grid steps
    # sooner.  Conservative fallback if the query is unavailable.
    try:
        vmem = pltpu.get_tpu_info().vmem_capacity_bytes
    except Exception:
        vmem = 0
    return 4096 if vmem >= 100 * 1024 * 1024 else 2048


def _mlp_kernel(x_ref, w1_ref, b1_ref, w2_ref, b2_ref, w3_ref, b3_ref, o_ref):
    # In-kernel bf16 downcast of the streamed f32 tile (VPU, hidden under MXU).
    xb = x_ref[...].astype(jnp.bfloat16)                       # (tb, D)

    # fc1 (transposed): (128, D) contracted with (tb, D) on D -> (128, tb).
    h1 = jax.lax.dot_general(
        w1_ref[...], xb,
        dimension_numbers=(((1,), (1,)), ((), ())),
        preferred_element_type=jnp.float32)
    h1 = h1 + b1_ref[...]                                      # f32 bias add
    # ReLU after the bf16 downcast (exact; bf16 VALU on v6e/v7x).
    h1 = jnp.maximum(h1.astype(jnp.bfloat16), 0)

    # fc2: (128, 128) @ (128, tb) -> (128, tb) f32.
    # Rows >= 64 of w2/b2 are zero-padded, so h2 rows 64..127 are exactly 0.
    h2 = jnp.dot(w2_ref[...], h1, preferred_element_type=jnp.float32)
    h2 = jnp.maximum(h2 + b2_ref[...], 0.0)

    # fc3 as a weighted sublane reduce -> lane-dense (1, tb) row.
    # Padded rows of w3 are zero, so the padded h2 rows contribute nothing.
    h3 = jnp.sum(h2 * w3_ref[...], axis=0, keepdims=True) + b3_ref[...]
    o_ref[...] = h3[None].astype(o_ref.dtype)                  # (1, 1, tb)


def prepare_params(params):
    """One-time packing of f32 (PyTorch-layout-ish) params into kernel layout.

    Weights for the two MXU matmuls are cast to bf16; biases and the fc3
    weights stay f32.  Hidden-2 is zero-padded 64 -> 128 sublanes.
    """
    w1t = params["w1"].T.astype(jnp.bfloat16)                            # (128, D)
    b1 = params["b1"].reshape(_H1, 1)                                    # (128, 1)
    w2t = jnp.pad(params["w2"].T,
                  ((0, _H2_PAD - _H2), (0, 0))).astype(jnp.bfloat16)     # (128, 128)
    b2 = jnp.pad(params["b2"].reshape(_H2, 1),
                 ((0, _H2_PAD - _H2), (0, 0)))                           # (128, 1)
    w3 = jnp.pad(params["w3"], ((0, _H2_PAD - _H2), (0, 0)))             # (128, 1)
    b3 = params["b3"].reshape(1, 1)                                      # (1, 1)
    return {"w1t": w1t, "b1": b1, "w2t": w2t, "b2": b2, "w3": w3, "b3": b3}


@functools.partial(jax.jit, static_argnames=("max_tile",))
def pitch_shift_predictor(x, packed, *, max_tile=None):
    """x: (B, input_dim) float32.  packed: output of prepare_params()."""
    B, D = x.shape
    if max_tile is None:
        max_tile = _default_max_tile()

    # --- batch tiling -------------------------------------------------------
    # >=2 grid steps when the batch is big enough (v7x megacore), 512-row floor
    # so tiny batches are not over-split, tile capped for VMEM.  No padding of
    # x: the last (ragged) tile reads OOB rows whose outputs are discarded.
    gran = 128 if B >= 128 else 8
    tb = _round_up(-(-B // 2), gran)          # aim for 2 grid steps
    tb = max(tb, 512)                          # per-step overhead floor
    tb = min(tb, max_tile)                     # VMEM cap
    tb = min(tb, _round_up(B, gran))           # never (much) beyond the batch
    num_tiles = -(-B // tb)

    const = lambda a: pl.BlockSpec(a.shape, lambda i: (0, 0))  # VMEM-resident

    out = pl.pallas_call(
        _mlp_kernel,
        out_shape=jax.ShapeDtypeStruct((num_tiles, 1, tb), jnp.float32),
        grid=(num_tiles,),
        in_specs=[
            pl.BlockSpec((tb, D), lambda i: (i, 0)),   # x: streamed f32 tiles
            const(packed["w1t"]), const(packed["b1"]),
            const(packed["w2t"]), const(packed["b2"]),
            const(packed["w3"]), const(packed["b3"]),
        ],
        out_specs=pl.BlockSpec((1, 1, tb), lambda i: (i, 0, 0)),
        compiler_params=pltpu.CompilerParams(
            dimension_semantics=("parallel",),
            vmem_limit_bytes=32 * 1024 * 1024,
        ),
    )(x, packed["w1t"], packed["b1"], packed["w2t"], packed["b2"],
      packed["w3"], packed["b3"])

    # (num_tiles, 1, tb) -> (B, 1); the reshape is contiguous (free), the slice
    # only trims the ragged tail.
    return out.reshape(num_tiles * tb)[:B].reshape(B, 1)


def init_params(key, input_dim):
    """Deterministic init mirroring nn.Linear default (uniform +-1/sqrt(fan_in)).

    Weights stored (in, out) like the original x @ W^T convention transposed;
    biases kept 2D (1, out).
    """
    dims = [(input_dim, _H1), (_H1, _H2), (_H2, 1)]
    params = {}
    for i, (fan_in, fan_out) in enumerate(dims, start=1):
        key, kw, kb = jax.random.split(key, 3)
        bound = 1.0 / jnp.sqrt(jnp.float32(fan_in))
        params[f"w{i}"] = jax.random.uniform(
            kw, (fan_in, fan_out), jnp.float32, -bound, bound)
        params[f"b{i}"] = jax.random.uniform(
            kb, (1, fan_out), jnp.float32, -bound, bound)
    return params


def _reference(x, p):
    """Pure-JAX reference following the same dtype path as the kernel
    (bf16 matmul operands for fc1/fc2, f32 accumulation / elementwise, f32 fc3)."""
    h = jnp.dot(x.astype(jnp.bfloat16), p["w1"].astype(jnp.bfloat16),
                preferred_element_type=jnp.float32) + p["b1"]
    h = jnp.maximum(h.astype(jnp.bfloat16), 0)
    h = jnp.dot(h, p["w2"].astype(jnp.bfloat16),
                preferred_element_type=jnp.float32) + p["b2"]
    h = jnp.maximum(h, 0.0)
    return jnp.dot(h, p["w3"], preferred_element_type=jnp.float32) + p["b3"]


if __name__ == "__main__":
    key = jax.random.PRNGKey(0)
    key, kx, kp = jax.random.split(key, 3)

    batch, input_dim = 8, 32
    x = jax.random.normal(kx, (batch, input_dim), jnp.float32)
    params = init_params(kp, input_dim)
    packed = prepare_params(params)

    out = pitch_shift_predictor(x, packed)
    out = jax.block_until_ready(out)

    ref = _reference(x, params)
    assert out.shape == (batch, 1), out.shape
    assert jnp.allclose(out, ref, atol=2e-3, rtol=2e-3), "mismatch vs reference"

    print("KERNEL_OK")
</pallas_src>

<mosaic_0001>
module attributes {stable_mosaic.version = 11 : i64} {
  func.func @_mlp_kernel(%arg0: i32, %arg1: memref<8x32xf32, #tpu.memory_space<vmem>>, %arg2: memref<128x32xbf16, #tpu.memory_space<vmem>>, %arg3: memref<128x1xf32, #tpu.memory_space<vmem>>, %arg4: memref<128x128xbf16, #tpu.memory_space<vmem>>, %arg5: memref<128x1xf32, #tpu.memory_space<vmem>>, %arg6: memref<128x1xf32, #tpu.memory_space<vmem>>, %arg7: memref<1x1xf32, #tpu.memory_space<vmem>>, %arg8: memref<1x1x8xf32, #tpu.memory_space<vmem>>) attributes {dimension_semantics = [#tpu.dimension_semantics<parallel>], iteration_bounds = array<i64: 1>, scalar_prefetch = 0 : i64, scratch_operands = 0 : i64, tpu.core_type = #tpu.core_type<tc>, window_params = [{transform_indices = @transform_0, window_bounds = array<i64: 8, 32>}, {pipeline_mode = #tpu.pipeline_mode<synchronous>, transform_indices = @transform_1, window_bounds = array<i64: 128, 32>}, {pipeline_mode = #tpu.pipeline_mode<synchronous>, transform_indices = @transform_2, window_bounds = array<i64: 128, 1>}, {pipeline_mode = #tpu.pipeline_mode<synchronous>, transform_indices = @transform_3, window_bounds = array<i64: 128, 128>}, {pipeline_mode = #tpu.pipeline_mode<synchronous>, transform_indices = @transform_4, window_bounds = array<i64: 128, 1>}, {pipeline_mode = #tpu.pipeline_mode<synchronous>, transform_indices = @transform_5, window_bounds = array<i64: 128, 1>}, {pipeline_mode = #tpu.pipeline_mode<synchronous>, transform_indices = @transform_6, window_bounds = array<i64: 1, 1>}, {transform_indices = @transform_7, window_bounds = array<i64: 1, 1, 8>}]} {
    %c0 = arith.constant 0 : index
    %c0_0 = arith.constant 0 : index
    %0 = vector.load %arg1[%c0, %c0_0] : memref<8x32xf32, #tpu.memory_space<vmem>>, vector<8x32xf32>
    %1 = arith.truncf %0 : vector<8x32xf32> to vector<8x32xbf16>
    %c0_1 = arith.constant 0 : index
    %c0_2 = arith.constant 0 : index
    %2 = vector.load %arg2[%c0_1, %c0_2] : memref<128x32xbf16, #tpu.memory_space<vmem>>, vector<128x32xbf16>
    %cst = arith.constant dense<0.000000e+00> : vector<128x8xf32>
    %3 = tpu.matmul %2, %1, %cst {dimension_numbers = #tpu.dot_dimension_numbers<[1], [1], [0], [0], [0, 0, 1, 0], [], []>} : vector<128x32xbf16>, vector<8x32xbf16>, vector<128x8xf32> -> vector<128x8xf32>
    %c0_3 = arith.constant 0 : index
    %c0_4 = arith.constant 0 : index
    %4 = vector.load %arg3[%c0_3, %c0_4] : memref<128x1xf32, #tpu.memory_space<vmem>>, vector<128x1xf32>
    %5 = vector.broadcast %4 : vector<128x1xf32> to vector<128x8xf32>
    %6 = arith.addf %3, %5 : vector<128x8xf32>
    %7 = arith.truncf %6 : vector<128x8xf32> to vector<128x8xbf16>
    %cst_5 = arith.constant 0.000000e+00 : bf16
    %8 = vector.broadcast %cst_5 : bf16 to vector<128x8xbf16>
    %9 = arith.maximumf %7, %8 : vector<128x8xbf16>
    %c0_6 = arith.constant 0 : index
    %c0_7 = arith.constant 0 : index
    %10 = vector.load %arg4[%c0_6, %c0_7] : memref<128x128xbf16, #tpu.memory_space<vmem>>, vector<128x128xbf16>
    %cst_8 = arith.constant dense<0.000000e+00> : vector<128x8xf32>
    %11 = tpu.matmul %10, %9, %cst_8 {dimension_numbers = #tpu.dot_dimension_numbers<[1], [0], [0], [1], [0, 0, 1, 1], [], []>} : vector<128x128xbf16>, vector<128x8xbf16>, vector<128x8xf32> -> vector<128x8xf32>
    %c0_9 = arith.constant 0 : index
    %c0_10 = arith.constant 0 : index
    %12 = vector.load %arg5[%c0_9, %c0_10] : memref<128x1xf32, #tpu.memory_space<vmem>>, vector<128x1xf32>
    %13 = vector.broadcast %12 : vector<128x1xf32> to vector<128x8xf32>
    %14 = arith.addf %11, %13 : vector<128x8xf32>
    %cst_11 = arith.constant 0.000000e+00 : f32
    %15 = vector.broadcast %cst_11 : f32 to vector<128x8xf32>
    %16 = arith.maximumf %14, %15 : vector<128x8xf32>
    %c0_12 = arith.constant 0 : index
    %c0_13 = arith.constant 0 : index
    %17 = vector.load %arg6[%c0_12, %c0_13] : memref<128x1xf32, #tpu.memory_space<vmem>>, vector<128x1xf32>
    %18 = vector.broadcast %17 : vector<128x1xf32> to vector<128x8xf32>
    %19 = arith.mulf %16, %18 : vector<128x8xf32>
    %cst_14 = arith.constant dense<0.000000e+00> : vector<8xf32>
    %20 = vector.multi_reduction <add>, %19, %cst_14 [0] : vector<128x8xf32> to vector<8xf32>
    %21 = vector.shape_cast %20 : vector<8xf32> to vector<1x8xf32>
    %c0_15 = arith.constant 0 : index
    %c0_16 = arith.constant 0 : index
    %22 = vector.load %arg7[%c0_15, %c0_16] : memref<1x1xf32, #tpu.memory_space<vmem>>, vector<1x1xf32>
    %23 = vector.broadcast %22 : vector<1x1xf32> to vector<1x8xf32>
    %24 = arith.addf %21, %23 : vector<1x8xf32>
    %25 = vector.shape_cast %24 : vector<1x8xf32> to vector<1x1x8xf32>
    %c0_17 = arith.constant 0 : index
    %c0_18 = arith.constant 0 : index
    %c0_19 = arith.constant 0 : index
    %26 = vector.load %arg8[%c0_17, %c0_18, %c0_19] : memref<1x1x8xf32, #tpu.memory_space<vmem>>, vector<1x1x8xf32>
    tpu.vector_store %arg8[%c0_17, %c0_18, %c0_19], %25 {strides = array<i32>} : memref<1x1x8xf32, #tpu.memory_space<vmem>>, vector<1x1x8xf32>,
    return
  }
  func.func @transform_0(%arg0: i32) -> (i32, i32) {
    %c0_i32 = arith.constant 0 : i32
    %c0_i32_0 = arith.constant 0 : i32
    return %arg0, %c0_i32 : i32, i32
  }
  func.func @transform_1(%arg0: i32) -> (i32, i32) {
    %c0_i32 = arith.constant 0 : i32
    %c0_i32_0 = arith.constant 0 : i32
    %c0_i32_1 = arith.constant 0 : i32
    return %c0_i32, %c0_i32_0 : i32, i32
  }
  func.func @transform_2(%arg0: i32) -> (i32, i32) {
    %c0_i32 = arith.constant 0 : i32
    %c0_i32_0 = arith.constant 0 : i32
    %c0_i32_1 = arith.constant 0 : i32
    return %c0_i32, %c0_i32_0 : i32, i32
  }
  func.func @transform_3(%arg0: i32) -> (i32, i32) {
    %c0_i32 = arith.constant 0 : i32
    %c0_i32_0 = arith.constant 0 : i32
    %c0_i32_1 = arith.constant 0 : i32
    return %c0_i32, %c0_i32_0 : i32, i32
  }
  func.func @transform_4(%arg0: i32) -> (i32, i32) {
    %c0_i32 = arith.constant 0 : i32
    %c0_i32_0 = arith.constant 0 : i32
    %c0_i32_1 = arith.constant 0 : i32
    return %c0_i32, %c0_i32_0 : i32, i32
  }
  func.func @transform_5(%arg0: i32) -> (i32, i32) {
    %c0_i32 = arith.constant 0 : i32
    %c0_i32_0 = arith.constant 0 : i32
    %c0_i32_1 = arith.constant 0 : i32
    return %c0_i32, %c0_i32_0 : i32, i32
  }
  func.func @transform_6(%arg0: i32) -> (i32, i32) {
    %c0_i32 = arith.constant 0 : i32
    %c0_i32_0 = arith.constant 0 : i32
    %c0_i32_1 = arith.constant 0 : i32
    return %c0_i32, %c0_i32_0 : i32, i32
  }
  func.func @transform_7(%arg0: i32) -> (i32, i32, i32) {
    %c0_i32 = arith.constant 0 : i32
    %c0_i32_0 = arith.constant 0 : i32
    %c0_i32_1 = arith.constant 0 : i32
    return %arg0, %c0_i32, %c0_i32_0 : i32, i32, i32
  }
}

</mosaic_0001>

<bundles_post_ra>
// kernel: pitch_shift_predictor.1
= control target key start
LH: loop header
LB: loop body
LE: loop exit
PB: predicated region body
PF: predicated region fallthrough
CT: control target
= control target key end

     0   :  { %s1229_s0 = inlined_call_operand.vmem [shape: f32[8,32], index: 0, kind: input, shape index: {}]   ;;  %s1230_s1 = inlined_call_operand.vmem [shape: bf16[128,32], index: 1, kind: input, shape index: {}]   ;;  %s1231_s2 = inlined_call_operand.vmem [shape: f32[128,1], index: 2, kind: input, shape index: {}]   ;;  %s1232_s3 = inlined_call_operand.vmem [shape: bf16[128,128], index: 3, kind: input, shape index: {}]   ;;  %s1233_s4 = inlined_call_operand.vmem [shape: f32[128,1], index: 4, kind: input, shape index: {}]   ;;  %s1234_s5 = inlined_call_operand.vmem [shape: f32[128,1], index: 5, kind: input, shape index: {}]   ;;  %s1235_s6 = inlined_call_operand.<no memory space> [shape: f32[1,1], index: 6, kind: input, shape index: {}]   ;;  %s1236_s7 = inlined_call_operand.hbm [shape: f32[1,1,8], index: 7, kind: output, shape index: {}]  }
   0x1   :  { %v12_v0 = vstv %s1235_s6 }
   0x2   :  { %13 = vst [vmem:[#allocation2] sm:$0x1] %v12_v0 }
   0x3   :  { %v48_v1 = vld [vmem:[%s1231_s2] sm:$0xff]  ;;  %vm184_vm0 = vcmask 261120   ;;  %v50_v3 = vld [vmem:[%s1231_s2 + $0x10] sm:$0xff]  ;;  %v935_v4 = vmov 0   ;;  %v49_v6 = vld [vmem:[%s1231_s2 + $0x8] sm:$0xff] }
   0x4   :  { %v30_v2 = vld [vmem:[%s1229_s0] sm:$0xff]  ;;  %893 = vset.pattern.permute.xlu0 %v935_v4  ;;  %894 = vset.pattern.permute.xlu1 %v935_v4  ;;  %v51_v9 = vld [vmem:[%s1231_s2 + $0x18] sm:$0xff]  ;;  %v896_v11 = vld [vmem:[%s1230_s1 + $0x8] sm:$0xff]  }
   0x5   :  { %v31_v5 = vpack.c.bf16 %v30_v2, %v30_v2  ;;  %66 = vperm.xlu0 %893, %v48_v1   ;;  %76 = vperm.xlu1 %894, %v50_v3   ;;  %v895_v7 = vld [vmem:[%s1230_s1] sm:$0xff]   ;;  %v53_v12 = vld [vmem:[%s1231_s2 + $0x28] sm:$0xff]  ;;  %v897_v13 = vld [vmem:[%s1230_s1 + $0x10] sm:$0xff]  }
   0x6   :  { %826 = vmatprep.mubr.msk.bf16.mxu0 %vm184_vm0, %v895_v7  ;;  %v52_v10 = vld [vmem:[%s1231_s2 + $0x20] sm:$0xff]  ;;  %v54_v14 = vld [vmem:[%s1231_s2 + $0x30] sm:$0xff]  ;;  %v55_v15 = vld [vmem:[%s1231_s2 + $0x38] sm:$0xff] }
   0x7   :  { %890 = vmatprep.subr.msk.bf16.mxu0 %vm184_vm0, %v31_v5  ;;  %v210_v8 = vsel %vm184_vm0, %v31_v5, 0  ;;  %v56_v16 = vld [vmem:[%s1231_s2 + $0x40] sm:$0xff]  ;;  %v898_v17 = vld [vmem:[%s1230_s1 + $0x18] sm:$0xff]   ;;  %v57_v18 = vld [vmem:[%s1231_s2 + $0x48] sm:$0xff] }
   0x8   :  { %825 = vmatpush3.bf16.xpose.msra.mxu0 %v210_v8  ;;  %v899_v19 = vld [vmem:[%s1230_s1 + $0x20] sm:$0xff]   ;;  %v58_v20 = vld [vmem:[%s1231_s2 + $0x50] sm:$0xff]  ;;  %v59_v21 = vld [vmem:[%s1231_s2 + $0x58] sm:$0xff] }
   0x9   :  { %71 = vperm.xlu0 %893, %v49_v6   ;;  %81 = vperm.xlu1 %894, %v51_v9   ;;  %v60_v22 = vld [vmem:[%s1231_s2 + $0x60] sm:$0xff]  ;;  %v900_v23 = vld [vmem:[%s1230_s1 + $0x28] sm:$0xff]   ;;  %v901_v25 = vld [vmem:[%s1230_s1 + $0x30] sm:$0xff]  }
   0xa   :  { %v61_v24 = vld [vmem:[%s1231_s2 + $0x68] sm:$0xff]  ;;  %v62_v26 = vld [vmem:[%s1231_s2 + $0x70] sm:$0xff]  ;;  %v63_v27 = vld [vmem:[%s1231_s2 + $0x78] sm:$0xff] }
   0xd   :  { %86 = vperm.xlu0 %893, %v52_v10   ;;  %91 = vperm.xlu1 %894, %v53_v12  }
   0xf   :  { %827 = vmatmul.mubr.msk.bf16.vlgmr.msra.gmra.mrb[0].mxu0 %vm184_vm0, %v896_v11 }
  0x10   :  { %830 = vmatprep.mubr.msk.bf16.mxu0 %vm184_vm0, %v897_v13 }
  0x11   :  { %96 = vperm.xlu0 %893, %v54_v14   ;;  %101 = vperm.xlu1 %894, %v55_v15  }
  0x15   :  { %106 = vperm.xlu0 %893, %v56_v16   ;;  %111 = vperm.xlu1 %894, %v57_v18  }
  0x17   :  { %831 = vmatmul.mubr.msk.bf16.gmra.mrb[4].mxu0 %vm184_vm0, %v898_v17 }
  0x18   :  { %834 = vmatprep.mubr.msk.bf16.mxu0 %vm184_vm0, %v899_v19 }
  0x19   :  { %116 = vperm.xlu0 %893, %v58_v20   ;;  %121 = vperm.xlu1 %894, %v59_v21  }
  0x1d   :  { %126 = vperm.xlu0 %893, %v60_v22   ;;  %131 = vperm.xlu1 %894, %v61_v24  }
  0x1f   :  { %835 = vmatmul.mubr.msk.bf16.gmra.mrb[8].mxu0 %vm184_vm0, %v900_v23 }
  0x20   :  { %838 = vmatprep.mubr.msk.bf16.mxu0 %vm184_vm0, %v901_v25 }
  0x21   :  { %136 = vperm.xlu0 %893, %v62_v26   ;;  %141 = vperm.xlu1 %894, %v63_v27  }
  0x22   :  { %14 = vsyncpa [#allocation4], 0  ;;  %v341_v28 = vld [vmem:[%s1233_s4] sm:$0xff]  ;;  %v902_v29 = vld [vmem:[%s1230_s1 + $0x38] sm:$0xff]   ;;  %vm710_vm1 = vcmask 64512   ;;  %vm759_vm2 = vcmask 57344  }
  0x23   :  { %v342_v30 = vld [vmem:[%s1233_s4 + $0x8] sm:$0xff]  ;;  %v343_v31 = vld [vmem:[%s1233_s4 + $0x10] sm:$0xff]  ;;  %v344_v32 = vld [vmem:[%s1233_s4 + $0x18] sm:$0xff] }
  0x24   :  { %v345_v33 = vld [vmem:[%s1233_s4 + $0x20] sm:$0xff]  ;;  %v599_v35 = vld [vmem:[%s1234_s5 + $0x8] sm:$0xff]  ;;  %v600_v36 = vld [vmem:[%s1234_s5 + $0x10] sm:$0xff] }
  0x25   :  { %359 = vperm.xlu0 %893, %v341_v28   ;;  %364 = vperm.xlu1 %894, %v342_v30   ;;  %v598_v34 = vld [vmem:[%s1234_s5] sm:$0xff]  ;;  %v346_v37 = vld [vmem:[%s1233_s4 + $0x28] sm:$0xff]  ;;  %v601_v38 = vld [vmem:[%s1234_s5 + $0x18] sm:$0xff] }
  0x26   :  { %v347_v39 = vld [vmem:[%s1233_s4 + $0x30] sm:$0xff]  ;;  %v602_v40 = vld [vmem:[%s1234_s5 + $0x20] sm:$0xff]  ;;  %v348_v41 = vld [vmem:[%s1233_s4 + $0x38] sm:$0xff] }
  0x27   :  { %839 = vmatmul.mubr.msk.bf16.gmra.mrb[12].mxu0 %vm184_vm0, %v902_v29  ;;  %v603_v42 = vld [vmem:[%s1234_s5 + $0x28] sm:$0xff]  ;;  %v349_v43 = vld [vmem:[%s1233_s4 + $0x40] sm:$0xff]  ;;  %v604_v44 = vld [vmem:[%s1234_s5 + $0x30] sm:$0xff] }
  0x28   :  { %v350_v45 = vld [vmem:[%s1233_s4 + $0x48] sm:$0xff]  ;;  %v605_v46 = vld [vmem:[%s1234_s5 + $0x38] sm:$0xff]  ;;  %v351_v47 = vld [vmem:[%s1233_s4 + $0x50] sm:$0xff] }
  0x29   :  { %369 = vperm.xlu0 %893, %v343_v31   ;;  %374 = vperm.xlu1 %894, %v344_v32   ;;  %v606_v48 = vld [vmem:[%s1234_s5 + $0x40] sm:$0xff]  ;;  %v352_v49 = vld [vmem:[%s1233_s4 + $0x58] sm:$0xff]  ;;  %v607_v50 = vld [vmem:[%s1234_s5 + $0x48] sm:$0xff] }
  0x2a   :  { %v353_v51 = vld [vmem:[%s1233_s4 + $0x60] sm:$0xff]  ;;  %v608_v52 = vld [vmem:[%s1234_s5 + $0x50] sm:$0xff]  ;;  %v354_v53 = vld [vmem:[%s1233_s4 + $0x68] sm:$0xff] }
  0x2b   :  { %v609_v54 = vld [vmem:[%s1234_s5 + $0x58] sm:$0xff]  ;;  %v355_v55 = vld [vmem:[%s1233_s4 + $0x70] sm:$0xff]  ;;  %v610_v56 = vld [vmem:[%s1234_s5 + $0x60] sm:$0xff] }
  0x2c   :  { %v356_v57 = vld [vmem:[%s1233_s4 + $0x78] sm:$0xff]  ;;  %v611_v58 = vld [vmem:[%s1234_s5 + $0x68] sm:$0xff]  ;;  %v612_v59 = vld [vmem:[%s1234_s5 + $0x70] sm:$0xff] }
  0x2d   :  { %379 = vperm.xlu0 %893, %v345_v33   ;;  %616 = vperm.xlu1 %894, %v598_v34   ;;  %v613_v60 = vld [vmem:[%s1234_s5 + $0x78] sm:$0xff]  ;;  %v748_v61 = vld [vmem:[#allocation2] sm:$0x1]  ;;  %v904_v63 = vld [vmem:[%s1232_s3 + $0x10] sm:$0xff]  }
  0x2e   :  { %v903_v62 = vld [vmem:[%s1232_s3] sm:$0xff]   ;;  %862 = vmatprep.mubr.bf16.mxu1 %v904_v63 }
  0x2f   :  { %858 = vmatprep.mubr.bf16.mxu0 %v903_v62 }
  0x31   :  { %621 = vperm.xlu0 %893, %v599_v35   ;;  %626 = vperm.xlu1 %894, %v600_v36  }
  0x35   :  { %384 = vperm.xlu0 %893, %v346_v37   ;;  %631 = vperm.xlu1 %894, %v601_v38  }
  0x39   :  { %389 = vperm.xlu0 %893, %v347_v39   ;;  %636 = vperm.xlu1 %894, %v602_v40  }
  0x3d   :  { %394 = vperm.xlu0 %893, %v348_v41   ;;  %641 = vperm.xlu1 %894, %v603_v42  }
  0x41   :  { %399 = vperm.xlu0 %893, %v349_v43   ;;  %646 = vperm.xlu1 %894, %v604_v44  }
  0x45   :  { %404 = vperm.xlu0 %893, %v350_v45   ;;  %651 = vperm.xlu1 %894, %v605_v46  }
  0x49   :  { %409 = vperm.xlu0 %893, %v351_v47   ;;  %656 = vperm.xlu1 %894, %v606_v48  }
  0x4d   :  { %414 = vperm.xlu0 %893, %v352_v49   ;;  %661 = vperm.xlu1 %894, %v607_v50  }
  0x51   :  { %419 = vperm.xlu0 %893, %v353_v51   ;;  %666 = vperm.xlu1 %894, %v608_v52  }
  0x55   :  { %424 = vperm.xlu0 %893, %v354_v53   ;;  %671 = vperm.xlu1 %894, %v609_v54  }
  0x59   :  { %429 = vperm.xlu0 %893, %v355_v55   ;;  %676 = vperm.xlu1 %894, %v610_v56  }
  0x5d   :  { %434 = vperm.xlu0 %893, %v356_v57   ;;  %681 = vperm.xlu1 %894, %v611_v58  }
  0x61   :  { %686 = vperm.xlu0 %893, %v612_v59   ;;  %691 = vperm.xlu1 %894, %v613_v60  }
  0x65   :  { %751 = vperm.xlu0 %893, %v748_v61  }
  0x84   :  { %v67_v0 = vpop.permute.xlu0 %66  ;;  %v77_v1 = vpop.permute.xlu1 %76 }
  0x88   :  { %v72_v2 = vpop.permute.xlu0 %71  ;;  %v82_v3 = vpop.permute.xlu1 %81 }
  0x8c   :  { %v87_v5 = vpop.permute.xlu0 %86  ;;  %v92_v6 = vpop.permute.xlu1 %91 }
  0x90   :  { %v97_v8 = vpop.permute.xlu0 %96  ;;  %v102_v10 = vpop.permute.xlu1 %101 }
  0x94   :  { %v107_v19 = vpop.permute.xlu0 %106  ;;  %v112_v20 = vpop.permute.xlu1 %111 }
  0x98   :  { %v117_v31 = vpop.permute.xlu0 %116  ;;  %v122_v33 = vpop.permute.xlu1 %121 }
  0x9c   :  { %v127_v40 = vpop.permute.xlu0 %126  ;;  %v132_v44 = vpop.permute.xlu1 %131 }
  0xa0   :  { %v137_v51 = vpop.permute.xlu0 %136  ;;  %v142_v53 = vpop.permute.xlu1 %141 }
  0xe2   :  { %v828_v7 = vpop.f32.mrb[0].mxu0 }
  0xe3   :  { %v246_v9 = vpop.f32.mrb[1].mxu0  ;;  %v255_v12 = vadd.f32 %v828_v7, %v77_v1  ;;  %v905_v1 = vld [vmem:[%s1232_s3 + $0x8] sm:$0xff]   ;;  %v360_v7 = vpop.permute.xlu0 %359 }
  0xe4   :  { %v829_v11 = vpop.f32.mrb[2].mxu0  ;;  %v247_v15 = vadd.f32 %v246_v9, %v67_v0 }
  0xe5   :  { %v258_v13 = vadd.f32 %v829_v11, %v82_v3  ;;  %v249_v14 = vpop.f32.mrb[3].mxu0  ;;  %v908_v3 = vld [vmem:[%s1232_s3 + $0x28] sm:$0xff]  }
  0xe6   :  { %v250_v16 = vadd.f32 %v249_v14, %v72_v2  ;;  %v906_v2 = vld [vmem:[%s1232_s3 + $0x18] sm:$0xff]  }
  0xe7   :  { %v310_v17 = vpack.c.bf16 %v258_v13, %v255_v12  ;;  %v370_v9 = vpop.permute.xlu0 %369 }
  0xe8   :  { %v309_v18 = vpack.c.bf16 %v250_v16, %v247_v15 }
  0xe9   :  { %v318_v24 = vmax.bf16 %v935_v4, %v310_v17 }
  0xea   :  { %v317_v21 = vmax.bf16 %v935_v4, %v309_v18  ;;  %v832_v22 = vpop.f32.mrb[4].mxu0 }
  0xeb   :  { %v262_v23 = vpop.f32.mrb[5].mxu0  ;;  %v271_v26 = vadd.f32 %v832_v22, %v97_v8  ;;  %v365_v8 = vpop.permute.xlu1 %364 }
  0xec   :  { %v833_v25 = vpop.f32.mrb[6].mxu0  ;;  %842 = vmatprep.subr.bf16.mxu0 %v317_v21  ;;  %874 = vmatprep.subr.bf16.mxu1 %v317_v21  ;;  %v263_v29 = vadd.f32 %v262_v23, %v87_v5  ;;  %v909_v5 = vld [vmem:[%s1232_s3 + $0x30] sm:$0xff]   ;;  %v380_v11 = vpop.permute.xlu0 %379 }
  0xed   :  { %v274_v27 = vadd.f32 %v833_v25, %v102_v10  ;;  %v265_v28 = vpop.f32.mrb[7].mxu0  ;;  %843 = vmatpush3.bf16.msra.mxu0 %v317_v21  ;;  %882 = vmatpush3.bf16.msra.mxu1 %v317_v21 }
  0xee   :  { %v266_v30 = vadd.f32 %v265_v28, %v92_v6  ;;  %844 = vmatprep.subr.bf16.mxu0 %v318_v24  ;;  %875 = vmatprep.subr.bf16.mxu1 %v318_v24  ;;  %v910_v6 = vld [vmem:[%s1232_s3 + $0x38] sm:$0xff]  }
  0xef   :  { %v312_v32 = vpack.c.bf16 %v274_v27, %v271_v26  ;;  %v375_v10 = vpop.permute.xlu1 %374 }
  0xf0   :  { %v311_v34 = vpack.c.bf16 %v266_v30, %v263_v29  ;;  %v622_v13 = vpop.permute.xlu0 %621 }
  0xf1   :  { %845 = vmatpush3.bf16.msra.mxu0 %v318_v24  ;;  %883 = vmatpush3.bf16.msra.mxu1 %v318_v24  ;;  %v320_v38 = vmax.bf16 %v935_v4, %v312_v32 }
  0xf2   :  { %v319_v35 = vmax.bf16 %v935_v4, %v311_v34  ;;  %v836_v36 = vpop.f32.mrb[8].mxu0 }
  0xf3   :  { %v278_v37 = vpop.f32.mrb[9].mxu0  ;;  %v287_v41 = vadd.f32 %v836_v36, %v117_v31  ;;  %v617_v12 = vpop.permute.xlu1 %616 }
  0xf4   :  { %v837_v39 = vpop.f32.mrb[10].mxu0  ;;  %846 = vmatprep.subr.bf16.mxu0 %v319_v35  ;;  %876 = vmatprep.subr.bf16.mxu1 %v319_v35  ;;  %v279_v45 = vadd.f32 %v278_v37, %v107_v19  ;;  %v385_v15 = vpop.permute.xlu0 %384 }
  0xf5   :  { %v290_v42 = vadd.f32 %v837_v39, %v122_v33  ;;  %v281_v43 = vpop.f32.mrb[11].mxu0  ;;  %847 = vmatpush3.bf16.msra.mxu0 %v319_v35  ;;  %884 = vmatpush3.bf16.msra.mxu1 %v319_v35 }
  0xf6   :  { %v282_v46 = vadd.f32 %v281_v43, %v112_v20  ;;  %848 = vmatprep.subr.bf16.mxu0 %v320_v38  ;;  %877 = vmatprep.subr.bf16.mxu1 %v320_v38 }
  0xf7   :  { %v314_v47 = vpack.c.bf16 %v290_v42, %v287_v41  ;;  %v627_v14 = vpop.permute.xlu1 %626 }
  0xf8   :  { %v313_v48 = vpack.c.bf16 %v282_v46, %v279_v45  ;;  %v390_v17 = vpop.permute.xlu0 %389 }
  0xf9   :  { %849 = vmatpush3.bf16.msra.mxu0 %v320_v38  ;;  %885 = vmatpush3.bf16.msra.mxu1 %v320_v38  ;;  %v322_v54 = vmax.bf16 %v935_v4, %v314_v47 }
  0xfa   :  { %v321_v49 = vmax.bf16 %v935_v4, %v313_v48  ;;  %v840_v50 = vpop.f32.mrb[12].mxu0 }
  0xfb   :  { %v294_v52 = vpop.f32.mrb[13].mxu0  ;;  %v303_v56 = vadd.f32 %v840_v50, %v137_v51  ;;  %v632_v16 = vpop.permute.xlu1 %631 }
  0xfc   :  { %v841_v55 = vpop.f32.mrb[14].mxu0  ;;  %850 = vmatprep.subr.bf16.mxu0 %v321_v49  ;;  %878 = vmatprep.subr.bf16.mxu1 %v321_v49  ;;  %v295_v59 = vadd.f32 %v294_v52, %v127_v40  ;;  %v395_v19 = vpop.permute.xlu0 %394 }
  0xfd   :  { %v306_v57 = vadd.f32 %v841_v55, %v142_v53  ;;  %v297_v58 = vpop.f32.mrb[15].mxu0  ;;  %851 = vmatpush3.bf16.msra.mxu0 %v321_v49  ;;  %886 = vmatpush3.bf16.msra.mxu1 %v321_v49 }
  0xfe   :  { %v298_v60 = vadd.f32 %v297_v58, %v132_v44  ;;  %852 = vmatprep.subr.bf16.mxu0 %v322_v54  ;;  %879 = vmatprep.subr.bf16.mxu1 %v322_v54 }
  0xff   :  { %v316_v61 = vpack.c.bf16 %v306_v57, %v303_v56  ;;  %v637_v18 = vpop.permute.xlu1 %636 }
 0x100   :  { %v315_v62 = vpack.c.bf16 %v298_v60, %v295_v59  ;;  %v400_v21 = vpop.permute.xlu0 %399 }
 0x101   :  { %853 = vmatpush3.bf16.msra.mxu0 %v322_v54  ;;  %887 = vmatpush3.bf16.msra.mxu1 %v322_v54  ;;  %v324_v0 = vmax.bf16 %v935_v4, %v316_v61 }
 0x102   :  { %v323_v63 = vmax.bf16 %v935_v4, %v315_v62  ;;  %v907_v4 = vld [vmem:[%s1232_s3 + $0x20] sm:$0xff]   ;;  %s936_s3 = smov [#allocation3]  }
 0x103   :  { %v642_v20 = vpop.permute.xlu1 %641  ;;  %s767_s23 = sshll.u32 %s936_s3, 4  ;;  %s768_s23 = int_to_ptr.vmem [resolvable:$true] %s767_s23 }
 0x104   :  { %854 = vmatprep.subr.bf16.mxu0 %v323_v63  ;;  %880 = vmatprep.subr.bf16.mxu1 %v323_v63  ;;  %v405_v23 = vpop.permute.xlu0 %404  ;;  %s911_s24 = scalar_lea.vmem %s768_s23, 16  ;;  %s915_s25 = scalar_lea.vmem %s768_s23, 32 }
 0x105   :  { %855 = vmatpush3.bf16.msra.mxu0 %v323_v63  ;;  %888 = vmatpush3.bf16.msra.mxu1 %v323_v63  ;;  %p912_p0 = scmp.ne.s32.totalorder %s768_s23, %s911_s24  ;;  %p916_p1 = scmp.lt.s32.totalorder %s768_s23, %s768_s23 }
 0x106   :  { %856 = vmatprep.subr.bf16.mxu0 %v324_v0  ;;  %881 = vmatprep.subr.bf16.mxu1 %v324_v0  ;;  %p917_p2 = scmp.lt.s32.totalorder %s915_s25, %s911_s24 }
 0x107   :  { %v647_v22 = vpop.permute.xlu1 %646 }
 0x108   :  { %v410_v25 = vpop.permute.xlu0 %409  ;;  %p918_p3 = por %p917_p2, %p916_p1 }
 0x109   :  { %857 = vmatpush3.bf16.msra.mxu0 %v324_v0  ;;  %889 = vmatpush3.bf16.msra.mxu1 %v324_v0 }
 0x10a   :  { %p919_p4 = pnand %p918_p3, %p912_p0 }
 0x10b   :  { %v652_v24 = vpop.permute.xlu1 %651 }
 0x10c   :  { %859 = vmatmul.mubr.bf16.vlgmr.msra.gmra.mrb[16].mxu0 %v905_v1  ;;  %863 = vmatmul.mubr.bf16.vlgmr.msra.gmra.mrb[0].mxu1 %v906_v2  ;;  %v415_v27 = vpop.permute.xlu0 %414 }
 0x10d   :  { %866 = vmatprep.mubr.bf16.mxu1 %v907_v4 }
 0x10f   :  { %v1195_v26 = vpop.permute.xlu1 %656 }
 0x110   :  { %v420_v48 = vpop.permute.xlu0 %419 }
 0x113   :  { %v1197_v28 = vpop.permute.xlu1 %661 }
 0x114   :  { %867 = vmatmul.mubr.bf16.gmra.mrb[4].mxu1 %v908_v3  ;;  %v425_v3 = vpop.permute.xlu0 %424 }
 0x115   :  { %870 = vmatprep.mubr.bf16.mxu1 %v909_v5 }
 0x117   :  { %v667_v54 = vpop.permute.xlu1 %666 }
 0x11c   :  { %871 = vmatmul.mubr.bf16.gmra.mrb[8].mxu1 %v910_v6 }
 0x1df   :  { %v860_v29 = vpop.f32.mrb[16].mxu0  ;;  %v864_v30 = vpop.f32.mrb[0].mxu1 }
 0x1e0   :  { %v528_v31 = vadd.f32 %v860_v29, %v370_v9  ;;  %v519_v32 = vpop.f32.mrb[17].mxu0  ;;  %v535_v33 = vpop.f32.mrb[1].mxu1  ;;  %v544_v50 = vadd.f32 %v864_v30, %v390_v17 }
 0x1e1   :  { %v520_v34 = vadd.f32 %v519_v32, %v360_v7  ;;  %v861_v35 = vpop.f32.mrb[18].mxu0  ;;  %v865_v36 = vpop.f32.mrb[2].mxu1  ;;  %v536_v42 = vadd.f32 %v535_v33, %v380_v11 }
 0x1e2   :  { %v531_v37 = vadd.f32 %v861_v35, %v375_v10  ;;  %v522_v38 = vpop.f32.mrb[19].mxu0  ;;  %v538_v39 = vpop.f32.mrb[3].mxu1  ;;  %v584_v40 = vmax.f32 %v528_v31, 0.0  ;;  %v547_v55 = vadd.f32 %v865_v36, %v395_v19  ;;  %v588_v1 = vmax.f32 %v544_v50, 0.0 }
 0x1e3   :  { %v582_v41 = vmax.f32 %v520_v34, 0.0  ;;  %v523_v43 = vadd.f32 %v522_v38, %v365_v8  ;;  %v539_v47 = vadd.f32 %v538_v39, %v385_v15  ;;  %v586_v51 = vmax.f32 %v536_v42, 0.0  ;;  %v672_v10 = vpop.permute.xlu1 %671  ;;  %v430_v32 = vpop.permute.xlu0 %429 }
 0x1e4   :  { %v585_v45 = vmax.f32 %v531_v37, 0.0  ;;  %v696_v49 = vmul.f32 %v627_v14, %v584_v40  ;;  %v589_v7 = vmax.f32 %v547_v55, 0.0 }
 0x1e5   :  { %v694_v44 = vmul.f32 %v617_v12, %v582_v41  ;;  %v583_v46 = vmax.f32 %v523_v43, 0.0  ;;  %v587_v60 = vmax.f32 %v539_v47, 0.0  ;;  %v698_v2 = vmul.f32 %v637_v18, %v586_v51 }
 0x1e6   :  { %v697_v58 = vmul.f32 %v632_v16, %v585_v45  ;;  %v714_v0 = vsel %vm710_vm1, %v696_v49, 0.0  ;;  %v700_v12 = vmul.f32 %v647_v22, %v588_v1  ;;  %v701_v29 = vmul.f32 %v652_v24, %v589_v7 }
 0x1e7   :  { %v695_v52 = vmul.f32 %v622_v13, %v583_v46  ;;  %v868_v53 = vpop.f32.mrb[4].mxu1  ;;  %v711_v57 = vsel %vm710_vm1, %v694_v44, 0.0  ;;  %v699_v8 = vmul.f32 %v642_v20, %v587_v60  ;;  %v718_v13 = vsel %vm710_vm1, %v698_v2, 0.0  ;;  %v435_v44 = vpop.permute.xlu0 %434 }
 0x1e8   :  { %v551_v56 = vpop.f32.mrb[5].mxu1  ;;  %v716_v6 = vsel %vm710_vm1, %v697_v58, 0.0  ;;  %v560_v14 = vadd.f32 %v868_v53, %v410_v25  ;;  %v677_v25 = vpop.permute.xlu1 %676  ;;  %v724_v37 = vsel %vm710_vm1, %v701_v29, 0.0 }
 0x1e9   :  { %v712_v59 = vsel %vm710_vm1, %v695_v52, 0.0  ;;  %v869_v61 = vpop.f32.mrb[6].mxu1  ;;  %v552_v4 = vadd.f32 %v551_v56, %v400_v21  ;;  %v720_v18 = vsel %vm710_vm1, %v699_v8, 0.0 }
 0x1ea   :  { %v713_v62 = vadd.f32 %v712_v59, %v711_v57  ;;  %v554_v63 = vpop.f32.mrb[7].mxu1  ;;  %v563_v21 = vadd.f32 %v869_v61, %v415_v27  ;;  %v592_v34 = vmax.f32 %v560_v14, 0.0 }
 0x1eb   :  { %v555_v9 = vadd.f32 %v554_v63, %v405_v23  ;;  %v590_v15 = vmax.f32 %v552_v4, 0.0  ;;  %v722_v23 = vsel %vm710_vm1, %v700_v12, 0.0  ;;  %v687_v57 = vpop.permute.xlu0 %686 }
 0x1ec   :  { %v715_v5 = vadd.f32 %v714_v0, %v713_v62  ;;  %v593_v38 = vmax.f32 %v563_v21, 0.0  ;;  %v704_v40 = vmul.f32 %v667_v54, %v592_v34  ;;  %v682_v49 = vpop.permute.xlu1 %681 }
 0x1ed   :  { %v591_v30 = vmax.f32 %v555_v9, 0.0  ;;  %v702_v22 = vmul.f32 %v1195_v26, %v590_v15 }
 0x1ee   :  { %v717_v11 = vadd.f32 %v716_v6, %v715_v5  ;;  %v705_v46 = vmul.f32 %v672_v10, %v593_v38  ;;  %v730_v51 = vsel %vm710_vm1, %v704_v40, 0.0  ;;  %v754_v5 = vlaneseq }
 0x1ef   :  { %v872_v16 = vpop.f32.mrb[8].mxu1  ;;  %v703_v24 = vmul.f32 %v1197_v28, %v591_v30  ;;  %v726_v41 = vsel %vm710_vm1, %v702_v22, 0.0 }
 0x1f0   :  { %v719_v17 = vadd.f32 %v718_v13, %v717_v11  ;;  %v567_v19 = vpop.f32.mrb[9].mxu1  ;;  %v576_v42 = vadd.f32 %v872_v16, %v430_v32  ;;  %v732_v54 = vsel %vm710_vm1, %v705_v46, 0.0  ;;  %v692_v61 = vpop.permute.xlu1 %691  ;;  %v755_v8 = vshrl.u32 %v754_v5, 7 }
 0x1f1   :  { %v873_v31 = vpop.f32.mrb[10].mxu1  ;;  %v568_v35 = vadd.f32 %v567_v19, %v420_v48  ;;  %v728_v26 = vsel %vm710_vm1, %v703_v24, 0.0  ;;  %v752_v13 = vpop.permute.xlu0 %751 }
 0x1f2   :  { %v721_v33 = vadd.f32 %v720_v18, %v719_v17  ;;  %v570_v20 = vpop.f32.mrb[11].mxu1  ;;  %v579_v47 = vadd.f32 %v873_v31, %v435_v44  ;;  %v596_v52 = vmax.f32 %v576_v42, 0.0  ;;  %v756_v11 = vsub.s32 0, %v755_v8 }
 0x1f3   :  { %v571_v39 = vadd.f32 %v570_v20, %v425_v3  ;;  %v594_v43 = vmax.f32 %v568_v35, 0.0 }
 0x1f4   :  { %v723_v36 = vadd.f32 %v722_v23, %v721_v33  ;;  %v597_v55 = vmax.f32 %v579_v47, 0.0  ;;  %v708_v59 = vmul.f32 %v687_v57, %v596_v52  ;;  %v757_v15 = vrot.slane %v752_v13, %v756_v11 }
 0x1f5   :  { %v595_v48 = vmax.f32 %v571_v39, 0.0  ;;  %v706_v28 = vmul.f32 %v677_v25, %v594_v43 }
 0x1f6   :  { %v725_v27 = vadd.f32 %v724_v37, %v723_v36  ;;  %v709_v63 = vmul.f32 %v692_v61, %v597_v55  ;;  %v738_v2 = vsel %vm710_vm1, %v708_v59, 0.0 }
 0x1f7   :  { %v707_v56 = vmul.f32 %v682_v49, %v595_v48  ;;  %v734_v60 = vsel %vm710_vm1, %v706_v28, 0.0 }
 0x1f8   :  { %v727_v45 = vadd.f32 %v726_v41, %v725_v27  ;;  %v740_v3 = vsel %vm710_vm1, %v709_v63, 0.0 }
 0x1f9   :  { %v736_v0 = vsel %vm710_vm1, %v707_v56, 0.0 }
 0x1fa   :  { %v729_v50 = vadd.f32 %v728_v26, %v727_v45 }
 0x1fc   :  { %v731_v53 = vadd.f32 %v730_v51, %v729_v50 }
 0x1fe   :  { %v733_v58 = vadd.f32 %v732_v54, %v731_v53 }
 0x200   :  { %v735_v62 = vadd.f32 %v734_v60, %v733_v58 }
 0x202   :  { %v737_v1 = vadd.f32 %v736_v0, %v735_v62 }
 0x204   :  { %v739_v4 = vadd.f32 %v738_v2, %v737_v1 }
 0x206   :  { %v741_v6 = vadd.f32 %v740_v3, %v739_v4 }
 0x208   :  { %v742_v7 = vrot.slane %v741_v6, 4 }
 0x20a   :  { %v743_v9 = vadd.f32 %v742_v7, %v741_v6 }
 0x20c   :  { %v744_v10 = vrot.slane %v743_v9, 2 }
 0x20e   :  { %v745_v12 = vadd.f32 %v744_v10, %v743_v9 }
 0x210   :  { %v746_v14 = vrot.slane %v745_v12, 1 }
 0x212   :  { %v747_v16 = vadd.f32 %v746_v14, %v745_v12 }
 0x214   :  { %v758_v17 = vadd.f32 %v757_v15, %v747_v16 }
 0x216   :  { %760 = vst.msk [vmem:[#allocation3] sm:$0x1] %vm759_vm2, %v758_v17 }
 0x217   :  { %922 = shalt.err (!%p919_p4)
}
 0x218   :  { %s923_s28 = scalar_lea.hbm %s1236_s7, 16 }
 0x219   :  { %p924_p5 = scmp.ne.s32.totalorder %s1236_s7, %s923_s28  ;;  %p927_p6 = scmp.lt.u32.totalorder %s923_s28, %s1236_s7 }
 0x21b   :  { %p929_p7 = pnand %p927_p6, %p924_p5 }
 0x21d   :  { %932 = shalt.err (!%p929_p7)
}
 0x21e   :  { %770 = dma.vmem_to_hbm [thread:$0]  %s768_s23, 16, %s1236_s7, [#allocation4]  }
 0x21f   :  { %933 = dma.done.wait [#allocation4], 16  }
 0x220   :  { %934 = vsyncadd [#allocation4], 4294967280 }
 0x221   :  { %774 = vsyncpa [#allocation4], 1 }

</bundles_post_ra>
